<compile_context>
chip_gen: v5e
topology: v5e:2x2
jax: 0.10.0
libtpu: 0.0.40
codegen_flags: <defaults>
</compile_context>

<pallas_src>
import functools

import jax
import jax.numpy as jnp
from jax.experimental import pallas as pl
from jax.experimental.pallas import tpu as pltpu


def _round_up(n: int, m: int) -> int:
    return ((n + m - 1) // m) * m


def _mlp_kernel(*refs, num_layers: int):
    """Fused MLP for one batch tile.

    refs = (x_ref, w_0, b_0, ..., w_{L-1}, b_{L-1}, out_ref)
    x / W in bf16 (MXU fast path), biases in f32, accumulation in f32.
    ReLU on all hidden layers; output layer is linear.
    """
    x_ref = refs[0]
    out_ref = refs[-1]
    wb = refs[1:-1]

    h = x_ref[...]                        # bf16 (TILE_B, D0_pad)
    for layer in range(num_layers):
        w = wb[2 * layer][...]            # bf16 (Din_pad, Dout_pad), VMEM-resident
        b = wb[2 * layer + 1][...]        # f32  (1, Dout_pad), VMEM-resident
        acc = jnp.dot(h, w, preferred_element_type=jnp.float32) + b
        if layer < num_layers - 1:
            # f32 epilogue (cheap on VPU); carry bf16 between layers to keep
            # vreg pressure low and feed the next MXU matmul in bf16.
            h = jnp.maximum(acc, 0.0).astype(jnp.bfloat16)
        else:
            out_ref[...] = acc.astype(out_ref.dtype)


def _const_block(i):
    # Weights / biases: same (only) block for every batch tile -> VMEM resident,
    # DMA'd once (block index never changes across the grid).
    return (0, 0)


def _vmem_estimate(tile_b, d_pad, w_pads, b_pads):
    """Rough VMEM footprint (bytes) for a given batch tile."""
    bytes_x = 2 * tile_b * d_pad[0] * 2               # bf16, double-buffered
    bytes_out = 2 * tile_b * d_pad[-1] * 4            # f32,  double-buffered
    bytes_w = sum(2 * wp.size * 2 for wp in w_pads)   # bf16, double-buffered
    bytes_b = sum(2 * bp.size * 4 for bp in b_pads)   # f32,  double-buffered
    bytes_act = 2 * tile_b * max(d_pad) * 4           # in-kernel intermediates
    return bytes_x + bytes_out + bytes_w + bytes_b + bytes_act


def climart_mlp_forward(x, weights, biases, *, max_tile_b: int = 512):
    """Run the fused MLP Pallas kernel and reshape the result to (B, 4, 50)."""
    num_layers = len(weights)
    batch = x.shape[0]
    out_dim = weights[-1].shape[1]
    assert out_dim == 200, "ClimartMLP reshapes its output to (B, 4, 50)"

    # ---- pad every feature dim to a multiple of 128 (lane-dense layout) ----
    dims = [weights[0].shape[0]] + [w.shape[1] for w in weights]
    d_pad = [_round_up(d, 128) for d in dims]

    # ---- zero-pad + cast parameters (padding lives outside the kernel) -----
    w_pads, b_pads = [], []
    for li, (w, b) in enumerate(zip(weights, biases)):
        w_p = jnp.zeros((d_pad[li], d_pad[li + 1]), jnp.bfloat16)
        w_p = w_p.at[: dims[li], : dims[li + 1]].set(w.astype(jnp.bfloat16))
        b_p = jnp.zeros((1, d_pad[li + 1]), jnp.float32)
        b_p = b_p.at[0, : dims[li + 1]].set(b.astype(jnp.float32))
        w_pads.append(w_p)
        b_pads.append(b_p)

    # ---- batch tile: largest tile (<= max_tile_b) that fits a VMEM budget ---
    vmem_budget = 48 << 20          # leave headroom under v7x's 64 MiB / TC
    tile_b = min(max_tile_b, _round_up(batch, 8))
    while tile_b > 8 and _vmem_estimate(tile_b, d_pad, w_pads, b_pads) > vmem_budget:
        tile_b //= 2
    tile_b = max(tile_b, 8)
    batch_pad = _round_up(batch, tile_b)

    # ---- zero-pad + cast input ----------------------------------------------
    x_p = jnp.zeros((batch_pad, d_pad[0]), jnp.bfloat16)
    x_p = x_p.at[:batch, : dims[0]].set(x.astype(jnp.bfloat16))

    operands = [x_p]
    for w_p, b_p in zip(w_pads, b_pads):
        operands += [w_p, b_p]

    # ---- BlockSpecs: stream x/out over the batch grid, weights resident -----
    in_specs = [pl.BlockSpec((tile_b, d_pad[0]), lambda i: (i, 0))]
    for w_p, b_p in zip(w_pads, b_pads):
        in_specs.append(pl.BlockSpec(w_p.shape, _const_block))
        in_specs.append(pl.BlockSpec(b_p.shape, _const_block))
    out_specs = pl.BlockSpec((tile_b, d_pad[-1]), lambda i: (i, 0))

    vmem_limit = _vmem_estimate(tile_b, d_pad, w_pads, b_pads) + (8 << 20)
    vmem_limit = int(min(max(vmem_limit, 32 << 20), 64 << 20))

    # ---- advisory cost estimate for the XLA scheduler -----------------------
    flops = 2 * batch_pad * sum(
        d_pad[i] * d_pad[i + 1] for i in range(num_layers)
    )
    bytes_accessed = (
        x_p.size * 2
        + sum(wp.size * 2 for wp in w_pads)
        + sum(bp.size * 4 for bp in b_pads)
        + batch_pad * d_pad[-1] * 4
    )
    cost = pl.CostEstimate(
        flops=flops, transcendentals=0, bytes_accessed=bytes_accessed
    )

    kernel = functools.partial(_mlp_kernel, num_layers=num_layers)

    y_pad = pl.pallas_call(
        kernel,
        grid=(batch_pad // tile_b,),
        in_specs=in_specs,
        out_specs=out_specs,
        out_shape=jax.ShapeDtypeStruct((batch_pad, d_pad[-1]), jnp.float32),
        compiler_params=pltpu.CompilerParams(
            dimension_semantics=("parallel",),
            vmem_limit_bytes=vmem_limit,
        ),
        cost_estimate=cost,
    )(*operands)

    # Strip padding and apply torch.reshape(X, (B, 4, 50)) outside the kernel.
    y = y_pad[:batch, :out_dim]
    return y.reshape(batch, 4, 50)


def init_params(key, raw_input_dim, hidden_dims, output_dim):
    """Deterministic synthetic parameter init (Kaiming-ish normals)."""
    dims = [raw_input_dim] + list(hidden_dims) + [output_dim]
    weights, biases = [], []
    for i in range(1, len(dims)):
        key, wk, bk = jax.random.split(key, 3)
        fan_in = dims[i - 1]
        w = jax.random.normal(wk, (dims[i - 1], dims[i]), jnp.float32)
        w = w * (1.0 / jnp.sqrt(jnp.float32(fan_in)))
        b = 0.01 * jax.random.normal(bk, (dims[i],), jnp.float32)
        weights.append(w)
        biases.append(b)
    return weights, biases


def reference_forward(x, weights, biases):
    """Pure-JAX f32 reference of the same forward pass."""
    h = x
    for i, (w, b) in enumerate(zip(weights, biases)):
        h = h @ w + b
        if i < len(weights) - 1:
            h = jnp.maximum(h, 0.0)
    return h.reshape(x.shape[0], 4, 50)


if __name__ == "__main__":
    # Small, module-consistent shapes: output_dim must be 200 (reshape -> (B,4,50)).
    batch = 8
    raw_input_dim = 64
    hidden_dims = [128, 128]
    output_dim = 200

    key = jax.random.PRNGKey(0)
    key, xk = jax.random.split(key)
    x = jax.random.normal(xk, (batch, raw_input_dim), jnp.float32)

    weights, biases = init_params(key, raw_input_dim, hidden_dims, output_dim)

    y = climart_mlp_forward(x, weights, biases)
    y = jax.block_until_ready(y)

    y_ref = reference_forward(x, weights, biases)
    assert y.shape == (batch, 4, 50), y.shape
    # bf16 MXU inputs with f32 accumulation -> compare at bf16-level tolerance.
    assert jnp.allclose(y, y_ref, atol=5e-2, rtol=5e-2), float(
        jnp.max(jnp.abs(y - y_ref))
    )

    print("KERNEL_OK")
</pallas_src>

<mosaic_0001>
module attributes {stable_mosaic.version = 11 : i64} {
  func.func @_mlp_kernel(%arg0: i32, %arg1: memref<8x128xbf16, #tpu.memory_space<vmem>>, %arg2: memref<128x128xbf16, #tpu.memory_space<vmem>>, %arg3: memref<1x128xf32, #tpu.memory_space<vmem>>, %arg4: memref<128x128xbf16, #tpu.memory_space<vmem>>, %arg5: memref<1x128xf32, #tpu.memory_space<vmem>>, %arg6: memref<128x256xbf16, #tpu.memory_space<vmem>>, %arg7: memref<1x256xf32, #tpu.memory_space<vmem>>, %arg8: memref<8x256xf32, #tpu.memory_space<vmem>>) attributes {dimension_semantics = [#tpu.dimension_semantics<parallel>], iteration_bounds = array<i64: 1>, scalar_prefetch = 0 : i64, scratch_operands = 0 : i64, tpu.core_type = #tpu.core_type<tc>, window_params = [{transform_indices = @transform_0, window_bounds = array<i64: 8, 128>}, {pipeline_mode = #tpu.pipeline_mode<synchronous>, transform_indices = @transform_1, window_bounds = array<i64: 128, 128>}, {pipeline_mode = #tpu.pipeline_mode<synchronous>, transform_indices = @transform_2, window_bounds = array<i64: 1, 128>}, {pipeline_mode = #tpu.pipeline_mode<synchronous>, transform_indices = @transform_3, window_bounds = array<i64: 128, 128>}, {pipeline_mode = #tpu.pipeline_mode<synchronous>, transform_indices = @transform_4, window_bounds = array<i64: 1, 128>}, {pipeline_mode = #tpu.pipeline_mode<synchronous>, transform_indices = @transform_5, window_bounds = array<i64: 128, 256>}, {pipeline_mode = #tpu.pipeline_mode<synchronous>, transform_indices = @transform_6, window_bounds = array<i64: 1, 256>}, {transform_indices = @transform_7, window_bounds = array<i64: 8, 256>}]} {
    %c0 = arith.constant 0 : index
    %c0_0 = arith.constant 0 : index
    %0 = vector.load %arg1[%c0, %c0_0] : memref<8x128xbf16, #tpu.memory_space<vmem>>, vector<8x128xbf16>
    %c0_1 = arith.constant 0 : index
    %c0_2 = arith.constant 0 : index
    %1 = vector.load %arg2[%c0_1, %c0_2] : memref<128x128xbf16, #tpu.memory_space<vmem>>, vector<128x128xbf16>
    %c0_3 = arith.constant 0 : index
    %c0_4 = arith.constant 0 : index
    %2 = vector.load %arg3[%c0_3, %c0_4] : memref<1x128xf32, #tpu.memory_space<vmem>>, vector<1x128xf32>
    %cst = arith.constant dense<0.000000e+00> : vector<8x128xf32>
    %3 = tpu.matmul %0, %1, %cst {dimension_numbers = #tpu.dot_dimension_numbers<[1], [0], [0], [1], [0, 0, 1, 1], [], []>} : vector<8x128xbf16>, vector<128x128xbf16>, vector<8x128xf32> -> vector<8x128xf32>
    %4 = vector.broadcast %2 : vector<1x128xf32> to vector<8x128xf32>
    %5 = arith.addf %3, %4 : vector<8x128xf32>
    %cst_5 = arith.constant 0.000000e+00 : f32
    %6 = vector.broadcast %cst_5 : f32 to vector<8x128xf32>
    %7 = arith.maximumf %5, %6 : vector<8x128xf32>
    %8 = arith.truncf %7 : vector<8x128xf32> to vector<8x128xbf16>
    %c0_6 = arith.constant 0 : index
    %c0_7 = arith.constant 0 : index
    %9 = vector.load %arg4[%c0_6, %c0_7] : memref<128x128xbf16, #tpu.memory_space<vmem>>, vector<128x128xbf16>
    %c0_8 = arith.constant 0 : index
    %c0_9 = arith.constant 0 : index
    %10 = vector.load %arg5[%c0_8, %c0_9] : memref<1x128xf32, #tpu.memory_space<vmem>>, vector<1x128xf32>
    %cst_10 = arith.constant dense<0.000000e+00> : vector<8x128xf32>
    %11 = tpu.matmul %8, %9, %cst_10 {dimension_numbers = #tpu.dot_dimension_numbers<[1], [0], [0], [1], [0, 0, 1, 1], [], []>} : vector<8x128xbf16>, vector<128x128xbf16>, vector<8x128xf32> -> vector<8x128xf32>
    %12 = vector.broadcast %10 : vector<1x128xf32> to vector<8x128xf32>
    %13 = arith.addf %11, %12 : vector<8x128xf32>
    %cst_11 = arith.constant 0.000000e+00 : f32
    %14 = vector.broadcast %cst_11 : f32 to vector<8x128xf32>
    %15 = arith.maximumf %13, %14 : vector<8x128xf32>
    %16 = arith.truncf %15 : vector<8x128xf32> to vector<8x128xbf16>
    %c0_12 = arith.constant 0 : index
    %c0_13 = arith.constant 0 : index
    %17 = vector.load %arg6[%c0_12, %c0_13] : memref<128x256xbf16, #tpu.memory_space<vmem>>, vector<128x256xbf16>
    %c0_14 = arith.constant 0 : index
    %c0_15 = arith.constant 0 : index
    %18 = vector.load %arg7[%c0_14, %c0_15] : memref<1x256xf32, #tpu.memory_space<vmem>>, vector<1x256xf32>
    %cst_16 = arith.constant dense<0.000000e+00> : vector<8x256xf32>
    %19 = tpu.matmul %16, %17, %cst_16 {dimension_numbers = #tpu.dot_dimension_numbers<[1], [0], [0], [1], [0, 0, 1, 1], [], []>} : vector<8x128xbf16>, vector<128x256xbf16>, vector<8x256xf32> -> vector<8x256xf32>
    %20 = vector.broadcast %18 : vector<1x256xf32> to vector<8x256xf32>
    %21 = arith.addf %19, %20 : vector<8x256xf32>
    %c0_17 = arith.constant 0 : index
    %c0_18 = arith.constant 0 : index
    %22 = vector.load %arg8[%c0_17, %c0_18] : memref<8x256xf32, #tpu.memory_space<vmem>>, vector<8x256xf32>
    tpu.vector_store %arg8[%c0_17, %c0_18], %21 {strides = array<i32>} : memref<8x256xf32, #tpu.memory_space<vmem>>, vector<8x256xf32>,
    return
  }
  func.func @transform_0(%arg0: i32) -> (i32, i32) {
    %c0_i32 = arith.constant 0 : i32
    %c0_i32_0 = arith.constant 0 : i32
    return %arg0, %c0_i32 : i32, i32
  }
  func.func @transform_1(%arg0: i32) -> (i32, i32) {
    %c0_i32 = arith.constant 0 : i32
    %c0_i32_0 = arith.constant 0 : i32
    %c0_i32_1 = arith.constant 0 : i32
    return %c0_i32, %c0_i32_0 : i32, i32
  }
  func.func @transform_2(%arg0: i32) -> (i32, i32) {
    %c0_i32 = arith.constant 0 : i32
    %c0_i32_0 = arith.constant 0 : i32
    %c0_i32_1 = arith.constant 0 : i32
    return %c0_i32, %c0_i32_0 : i32, i32
  }
  func.func @transform_3(%arg0: i32) -> (i32, i32) {
    %c0_i32 = arith.constant 0 : i32
    %c0_i32_0 = arith.constant 0 : i32
    %c0_i32_1 = arith.constant 0 : i32
    return %c0_i32, %c0_i32_0 : i32, i32
  }
  func.func @transform_4(%arg0: i32) -> (i32, i32) {
    %c0_i32 = arith.constant 0 : i32
    %c0_i32_0 = arith.constant 0 : i32
    %c0_i32_1 = arith.constant 0 : i32
    return %c0_i32, %c0_i32_0 : i32, i32
  }
  func.func @transform_5(%arg0: i32) -> (i32, i32) {
    %c0_i32 = arith.constant 0 : i32
    %c0_i32_0 = arith.constant 0 : i32
    %c0_i32_1 = arith.constant 0 : i32
    return %c0_i32, %c0_i32_0 : i32, i32
  }
  func.func @transform_6(%arg0: i32) -> (i32, i32) {
    %c0_i32 = arith.constant 0 : i32
    %c0_i32_0 = arith.constant 0 : i32
    %c0_i32_1 = arith.constant 0 : i32
    return %c0_i32, %c0_i32_0 : i32, i32
  }
  func.func @transform_7(%arg0: i32) -> (i32, i32) {
    %c0_i32 = arith.constant 0 : i32
    %c0_i32_0 = arith.constant 0 : i32
    return %arg0, %c0_i32 : i32, i32
  }
}

</mosaic_0001>

<bundles_post_ra>
// kernel: tpu_custom_call.1
= control target key start
LH: loop header
LB: loop body
LE: loop exit
PB: predicated region body
PF: predicated region fallthrough
CT: control target
= control target key end

     0   :  { %12 = vsyncpa [#allocation3], 0  ;;  %s815_s0 = inlined_call_operand.hbm [shape: bf16[8,128], index: 0, kind: input, shape index: {}]   ;;  %s816_s1 = inlined_call_operand.hbm [shape: bf16[128,128], index: 1, kind: input, shape index: {}]   ;;  %s817_s2 = inlined_call_operand.vmem [shape: f32[1,128], index: 2, kind: input, shape index: {}]   ;;  %s818_s3 = inlined_call_operand.hbm [shape: bf16[128,128], index: 3, kind: input, shape index: {}]   ;;  %s819_s4 = inlined_call_operand.hbm [shape: f32[1,128], index: 4, kind: input, shape index: {}]   ;;  %s820_s5 = inlined_call_operand.hbm [shape: bf16[128,256], index: 5, kind: input, shape index: {}]   ;;  %s821_s6 = inlined_call_operand.vmem [shape: f32[1,256], index: 6, kind: input, shape index: {}]   ;;  %s822_s7 = inlined_call_operand.hbm [shape: f32[8,256], index: 7, kind: output, shape index: {}]  }
   0x1   :  { %13 = vsyncpa [#allocation6], 0 }
   0x2   :  { %14 = vsyncpa [#allocation9], 0  ;;  %s31_s26 = sshll.u32 %s816_s1, 4  ;;  %s32_s26 = int_to_ptr.hbm [resolvable:$true] %s31_s26 }
   0x3   :  { %15 = vsyncpa [#allocation4], 0  ;;  %s741_s27 = smov [#allocation5]   ;;  %s60_s8 = sshll.u32 %s819_s4, 4  ;;  %s61_s8 = int_to_ptr.hbm [resolvable:$true] %s60_s8 }
   0x4   :  { %s33_s28 = sshll.u32 %s741_s27, 4  ;;  %s742_s9 = smov 64   ;;  %s34_s28 = int_to_ptr.vmem [resolvable:$true] %s33_s28 }
   0x5   :  { %s743_s10 = smov 4   ;;  %s744_s11 = smov [#allocation8]  }
   0x6   :  { %39 = dma.hbm_to_vmem [thread:$0]  %s32_s26, 1024, %s34_s28, [#allocation6], %s742_s9, %s742_s9, %s743_s10  }
   0x7   :  { %s62_s12 = sshll.u32 %s744_s11, 4  ;;  %s21_s15 = sshll.u32 %s815_s0, 4  ;;  %s63_s12 = int_to_ptr.vmem [resolvable:$true] %s62_s12  ;;  %s22_s15 = int_to_ptr.hbm [resolvable:$true] %s21_s15 }
   0x8   :  { %65 = dma.hbm_to_vmem [thread:$0]  %s61_s8, 16, %s63_s12, [#allocation9]  }
   0x9   :  { %s46_s17 = sshll.u32 %s818_s3, 4  ;;  %s745_s18 = smov [#allocation2]   ;;  %s47_s17 = int_to_ptr.hbm [resolvable:$true] %s46_s17 }
   0xa   :  { %s23_s19 = sshll.u32 %s745_s18, 4  ;;  %s746_s4 = smov [#allocation7]   ;;  %s24_s19 = int_to_ptr.vmem [resolvable:$true] %s23_s19 }
   0xb   :  { %26 = dma.hbm_to_vmem [thread:$0]  %s22_s15, 64, %s24_s19, [#allocation3]  }
   0xc   :  { %s48_s20 = sshll.u32 %s746_s4, 4  ;;  %s70_s23 = sshll.u32 %s820_s5, 4  ;;  %s49_s20 = int_to_ptr.vmem [resolvable:$true] %s48_s20  ;;  %s71_s23 = int_to_ptr.hbm [resolvable:$true] %s70_s23 }
   0xd   :  { %54 = dma.hbm_to_vmem [thread:$0]  %s47_s17, 1024, %s49_s20, [#allocation6], %s742_s9, %s742_s9, %s743_s10  }
   0xe   :  { %s747_s0 = smov [#allocation10]   ;;  %s748_s25 = smov 128  }
   0xf   :  { %s72_s24 = sshll.u32 %s747_s0, 4  ;;  %s749_s26 = smov 8   ;;  %s73_s24 = int_to_ptr.vmem [resolvable:$true] %s72_s24 }
  0x10   :  { %78 = dma.hbm_to_vmem [thread:$0]  %s71_s23, 2048, %s73_s24, [#allocation9], %s748_s25, %s748_s25, %s749_s26  }
  0x11   :  { %733 = dma.done.wait [#allocation3], 64  }
  0x12   :  { %734 = vsyncadd [#allocation3], 4294967232 }
  0x13   :  { %735 = dma.done.wait [#allocation6], 2048  }
  0x14   :  { %736 = vsyncadd [#allocation6], 4294965248 }
  0x15   :  { %737 = dma.done.wait [#allocation9], 2064  }
  0x16   :  { %738 = vsyncadd [#allocation9], 4294965232  ;;  %v552_v0 = vld [vmem:[#allocation5 + $0x38] sm:$0xff]  ;;  %v551_v1 = vld [vmem:[#allocation5 + $0x30] sm:$0xff]  ;;  %s750_s28 = smov [#allocation11]   ;;  %s405_s9 = sshll.u32 %s822_s7, 4  ;;  %s406_s9 = int_to_ptr.hbm [resolvable:$true] %s405_s9 }
  0x17   :  { %170 = vmatpush.bf16.msra.mxu0 %v552_v0  ;;  %v560_v2 = vld [vmem:[#allocation7 + $0x38] sm:$0xff]  ;;  %v559_v3 = vld [vmem:[#allocation7 + $0x30] sm:$0xff]  ;;  %v550_v4 = vld [vmem:[#allocation5 + $0x28] sm:$0xff]  ;;  %s403_s29 = sshll.u32 %s750_s28, 4  ;;  %s404_s29 = int_to_ptr.vmem [resolvable:$true] %s403_s29 }
  0x18   :  { %253 = vmatpush.bf16.msra.mxu1 %v560_v2  ;;  %v558_v5 = vld [vmem:[#allocation7 + $0x28] sm:$0xff]  ;;  %v549_v6 = vld [vmem:[#allocation5 + $0x20] sm:$0xff]  ;;  %v548_v8 = vld [vmem:[#allocation5 + $0x18] sm:$0xff] }
  0x19   :  { %v557_v7 = vld [vmem:[#allocation7 + $0x20] sm:$0xff]  ;;  %v556_v9 = vld [vmem:[#allocation7 + $0x18] sm:$0xff]  ;;  %v547_v10 = vld [vmem:[#allocation5 + $0x10] sm:$0xff] }
  0x1a   :  { %v555_v11 = vld [vmem:[#allocation7 + $0x10] sm:$0xff]  ;;  %v546_v12 = vld [vmem:[#allocation5 + $0x8] sm:$0xff]  ;;  %v545_v13 = vld [vmem:[#allocation5] sm:$0xff] }
  0x1b   :  { %171 = vmatpush.bf16.msra.mxu0 %v551_v1  ;;  %v101_v14 = vld [vmem:[#allocation2] sm:$0xf]  ;;  %v554_v15 = vld [vmem:[#allocation7 + $0x8] sm:$0xff]  ;;  %v553_v16 = vld [vmem:[#allocation7] sm:$0xff] }
  0x1c   :  { %254 = vmatpush.bf16.msra.mxu1 %v559_v3  ;;  %v539_v17 = vld [vmem:[#allocation10 + $0x70] sm:$0xf]  ;;  %v576_v18 = vld [vmem:[#allocation10 + $0x74] sm:$0xf0]  ;;  %v575_v19 = vld [vmem:[#allocation10 + $0x74] sm:$0xf] }
  0x1d   :  { %v540_v20 = vor.u32 %v576_v18, %v539_v17  ;;  %v541_v21 = vld [vmem:[#allocation10 + $0x78] sm:$0xf0]  ;;  %v531_v22 = vld [vmem:[#allocation10 + $0x60] sm:$0xf]  ;;  %v574_v23 = vld [vmem:[#allocation10 + $0x64] sm:$0xf0] }
  0x1e   :  { %v544_v24 = vor.u32 %v575_v19, %v541_v21  ;;  %v573_v25 = vld [vmem:[#allocation10 + $0x64] sm:$0xf]  ;;  %v533_v26 = vld [vmem:[#allocation10 + $0x68] sm:$0xf0]  ;;  %v532_v27 = vor.u32 %v574_v23, %v531_v22  ;;  %v523_v29 = vld [vmem:[#allocation10 + $0x50] sm:$0xf] }
  0x1f   :  { %172 = vmatpush.bf16.msra.mxu0 %v550_v4  ;;  %370 = vmatpush.bf16.msra.mxu2 %v540_v20  ;;  %v536_v28 = vor.u32 %v573_v25, %v533_v26  ;;  %v572_v30 = vld [vmem:[#allocation10 + $0x54] sm:$0xf0]  ;;  %v571_v31 = vld [vmem:[#allocation10 + $0x54] sm:$0xf]  ;;  %v525_v32 = vld [vmem:[#allocation10 + $0x58] sm:$0xf0] }
  0x20   :  { %255 = vmatpush.bf16.msra.mxu1 %v558_v5  ;;  %383 = vmatpush.bf16.msra.mxu3 %v544_v24  ;;  %v524_v33 = vor.u32 %v572_v30, %v523_v29  ;;  %v528_v34 = vor.u32 %v571_v31, %v525_v32  ;;  %v515_v35 = vld [vmem:[#allocation10 + $0x40] sm:$0xf]  ;;  %v570_v36 = vld [vmem:[#allocation10 + $0x44] sm:$0xf0]  ;;  %v569_v37 = vld [vmem:[#allocation10 + $0x44] sm:$0xf] }
  0x21   :  { %v517_v38 = vld [vmem:[#allocation10 + $0x48] sm:$0xf0]  ;;  %v516_v39 = vor.u32 %v570_v36, %v515_v35  ;;  %v507_v41 = vld [vmem:[#allocation10 + $0x30] sm:$0xf]  ;;  %v568_v42 = vld [vmem:[#allocation10 + $0x34] sm:$0xf0] }
  0x22   :  { %v520_v40 = vor.u32 %v569_v37, %v517_v38  ;;  %v567_v43 = vld [vmem:[#allocation10 + $0x34] sm:$0xf]  ;;  %v509_v44 = vld [vmem:[#allocation10 + $0x38] sm:$0xf0]  ;;  %v508_v45 = vor.u32 %v568_v42, %v507_v41  ;;  %v499_v47 = vld [vmem:[#allocation10 + $0x20] sm:$0xf] }
  0x23   :  { %173 = vmatpush.bf16.msra.mxu0 %v549_v6  ;;  %371 = vmatpush.bf16.msra.mxu2 %v532_v27  ;;  %v512_v46 = vor.u32 %v567_v43, %v509_v44  ;;  %v566_v48 = vld [vmem:[#allocation10 + $0x24] sm:$0xf0]  ;;  %v565_v49 = vld [vmem:[#allocation10 + $0x24] sm:$0xf]  ;;  %v501_v50 = vld [vmem:[#allocation10 + $0x28] sm:$0xf0] }
  0x24   :  { %256 = vmatpush.bf16.msra.mxu1 %v557_v7  ;;  %384 = vmatpush.bf16.msra.mxu3 %v536_v28  ;;  %v500_v51 = vor.u32 %v566_v48, %v499_v47  ;;  %v504_v52 = vor.u32 %v565_v49, %v501_v50  ;;  %v587_v53 = vld [vmem:[%s817_s2] ss:$0 sm:$0xff]  ;;  %v491_v59 = vld [vmem:[#allocation10 + $0x10] sm:$0xf]  ;;  %v563_v61 = vld [vmem:[#allocation10 + $0x14] sm:$0xf] }
  0x25   :  { %v564_v60 = vld [vmem:[#allocation10 + $0x14] sm:$0xf0]  ;;  %v493_v63 = vld [vmem:[#allocation10 + $0x18] sm:$0xf0]  ;;  %v483_v1 = vld [vmem:[#allocation10] sm:$0xf] }
  0x26   :  { %v492_v62 = vor.u32 %v564_v60, %v491_v59  ;;  %v496_v0 = vor.u32 %v563_v61, %v493_v63  ;;  %v562_v2 = vld [vmem:[#allocation10 + $0x4] sm:$0xf0]  ;;  %v561_v3 = vld [vmem:[#allocation10 + $0x4] sm:$0xf]  ;;  %v485_v5 = vld [vmem:[#allocation10 + $0x8] sm:$0xf0] }
  0x27   :  { %174 = vmatpush.bf16.msra.mxu0 %v548_v8  ;;  %372 = vmatpush.bf16.msra.mxu2 %v524_v33  ;;  %v484_v4 = vor.u32 %v562_v2, %v483_v1  ;;  %v488_v6 = vor.u32 %v561_v3, %v485_v5  ;;  %v588_v7 = vld [vmem:[#allocation8] ss:$0 sm:$0xff] }
  0x28   :  { %257 = vmatpush.bf16.msra.mxu1 %v556_v9  ;;  %385 = vmatpush.bf16.msra.mxu3 %v528_v34 }
  0x2b   :  { %175 = vmatpush.bf16.msra.mxu0 %v547_v10  ;;  %373 = vmatpush.bf16.msra.mxu2 %v516_v39 }
  0x2c   :  { %258 = vmatpush.bf16.msra.mxu1 %v555_v11  ;;  %386 = vmatpush.bf16.msra.mxu3 %v520_v40 }
  0x2f   :  { %176 = vmatpush.bf16.msra.mxu0 %v546_v12  ;;  %374 = vmatpush.bf16.msra.mxu2 %v508_v45 }
  0x30   :  { %259 = vmatpush.bf16.msra.mxu1 %v554_v15  ;;  %387 = vmatpush.bf16.msra.mxu3 %v512_v46 }
  0x33   :  { %177 = vmatpush.bf16.msra.mxu0 %v545_v13  ;;  %375 = vmatpush.bf16.msra.mxu2 %v500_v51  ;;  %v284_v13 = vld [vmem:[%s821_s6] sm:$0x3] }
  0x34   :  { %260 = vmatpush.bf16.msra.mxu1 %v553_v16  ;;  %388 = vmatpush.bf16.msra.mxu3 %v504_v52  ;;  %v287_v15 = vperm.slane %v284_v13, 1 }
  0x36   :  { %178 = vmatmul.bf16.vlgmr.msra.gmra.mxu0 %v101_v14  ;;  %v286_v14 = vperm.slane %v284_v13, 0 }
  0x37   :  { %376 = vmatpush.bf16.msra.mxu2 %v492_v62 }
  0x38   :  { %389 = vmatpush.bf16.msra.mxu3 %v496_v0 }
  0x3b   :  { %377 = vmatpush.bf16.msra.mxu2 %v484_v4 }
  0x3c   :  { %390 = vmatpush.bf16.msra.mxu3 %v488_v6 }
  0xb3   :  { %v179_v54 = vpop.f32.mrf.mxu0 }
  0xb4   :  { %v180_v55 = vadd.f32 %v587_v53, %v179_v54 }
  0xb6   :  { %v183_v56 = vmax.f32 %v180_v55, 0.0 }
  0xb8   :  { %v184_v57 = vpack.c.bf16 %v183_v56, %v183_v56 }
  0xba   :  { %261 = vmatmul.bf16.vlgmr.msra.gmra.mxu1 %v184_v57 }
  0xbb   :  { %v181_v58 = vpop.f32.mrf.mxu0 }
 0x137   :  { %v262_v8 = vpop.f32.mrf.mxu1 }
 0x138   :  { %v263_v9 = vadd.f32 %v588_v7, %v262_v8 }
 0x13a   :  { %v266_v10 = vmax.f32 %v263_v9, 0.0 }
 0x13c   :  { %v267_v11 = vpack.c.bf16 %v266_v10, %v266_v10 }
 0x13e   :  { %378 = vmatmul.bf16.vlgmr.msra.gmra.mxu2 %v267_v11  ;;  %391 = vmatmul.bf16.vlgmr.msra.gmra.mxu3 %v267_v11 }
 0x13f   :  { %v264_v12 = vpop.f32.mrf.mxu1 }
 0x1c1   :  { %v379_v16 = vpop.f32.mrf.mxu2  ;;  %v392_v17 = vpop.f32.mrf.mxu3 }
 0x1c2   :  { %v380_v18 = vadd.f32 %v379_v16, %v286_v14  ;;  %v393_v19 = vadd.f32 %v392_v17, %v287_v15 }
 0x1c4   :  { %396 = vst [vmem:[#allocation11] sm:$0xff] %v380_v18 }
 0x1c5   :  { %397 = vst [vmem:[#allocation11 + $0x8] sm:$0xff] %v393_v19 }
 0x1c6   :  { %408 = dma.vmem_to_hbm [thread:$0]  %s404_s29, 256, %s406_s9, [#allocation4]  }
 0x1c9   :  { %v381_v20 = vpop.f32.mrf.mxu2  ;;  %v394_v21 = vpop.f32.mrf.mxu3 }
 0x1ca   :  { %739 = dma.done.wait [#allocation4], 256  }
 0x1cb   :  { %740 = vsyncadd [#allocation4], 4294967040 }
 0x1cc   :  { %413 = vsyncpa [#allocation3], 1 }
 0x1cd   :  { %414 = vsyncpa [#allocation6], 1 }
 0x1ce   :  { %415 = vsyncpa [#allocation9], 1 }
 0x1cf   :  { %416 = vsyncpa [#allocation4], 1 }

</bundles_post_ra>
